<compile_context>
chip_gen: v7x
topology: tpu7x:2x2x1
jax: 0.10.0
libtpu: 0.0.40
codegen_flags: <defaults>
</compile_context>

<pallas_src>
import functools

import jax
import jax.numpy as jnp
from jax import lax
from jax.experimental import pallas as pl
from jax.experimental.pallas import tpu as pltpu

COS_EPS = 1e-8  # torch.nn.functional.cosine_similarity default eps

# Tunables (per-generation knobs per the perf review):
#   v7x : 4-5 MiB/input is safe under the 32 MiB default scoped VMEM; up to
#         ~8 MiB/input works with vmem_limit_bytes ~48 MiB (64 MiB physical).
#   v6e : 4-8 MiB/input; plenty of headroom under 128 MiB physical.
#   v5e : 4 MiB/input needs the explicit vmem_limit_bytes we always set
#         (default scoped limit is only 16 MiB).
_DEFAULT_TILE_BYTES_PER_INPUT = 4 * 1024 * 1024
_VMEM_WORKING_SET_CAP = 44 << 20   # inputs + outputs, double-buffered
_VMEM_HEADROOM = 4 << 20           # for Mosaic internal scratch


# --------------------------------------------------------------------------
# Kernel: streaming per-row triplet-cosine loss over batch tiles.
# --------------------------------------------------------------------------
def _triplet_rows_kernel(a_ref, p_ref, n_ref, loss_ref, *, margin):
    a = a_ref[...].astype(jnp.float32)
    p = p_ref[...].astype(jnp.float32)
    n = n_ref[...].astype(jnp.float32)

    # Row-wise dot products / squared norms (lane-axis reductions on the XLU).
    w_ap = jnp.sum(a * p, axis=1, keepdims=True)   # (TB, 1)
    w_an = jnp.sum(a * n, axis=1, keepdims=True)
    w_aa = jnp.sum(a * a, axis=1, keepdims=True)
    w_pp = jnp.sum(p * p, axis=1, keepdims=True)
    w_nn = jnp.sum(n * n, axis=1, keepdims=True)

    # torch cosine_similarity: w12 / sqrt(clamp_min(w1*w2, eps^2)).
    # rsqrt (EUP slot) + multiplies instead of sqrt + divide (VPU).
    eps2 = COS_EPS * COS_EPS
    phi_ap = w_ap * lax.rsqrt(jnp.maximum(w_aa * w_pp, eps2))
    phi_an = w_an * lax.rsqrt(jnp.maximum(w_aa * w_nn, eps2))

    # (1 - phi_ap) - (1 - phi_an) + margin == phi_an - phi_ap + margin
    loss_ref[...] = jnp.maximum(phi_an - phi_ap + margin, 0.0)


# --------------------------------------------------------------------------
# Tile sizing helpers (dtype-aware, VMEM-budget-capped).
# --------------------------------------------------------------------------
def _round_rows(rows, batch):
    rows = min(rows, batch)
    if rows >= batch:
        return batch                     # full-extent block is always legal
    if rows >= 128:
        return (rows // 128) * 128       # 128-multiple: clean sublane packing
    return max(8, (rows // 8) * 8)       # second-to-last dim must be 8-aligned


def _auto_block_rows(batch, dim, itemsize, tile_bytes):
    # Rows for >= `tile_bytes` of input per tile (dtype-aware).
    rows = max(8, tile_bytes // (dim * itemsize))
    # Cap the whole double-buffered working set: 3 inputs x 2 buffers in the
    # native dtype, plus 2 output buffers of (TB, 1) f32 (lane-padded to 128).
    per_row_vmem = 6 * dim * itemsize + 2 * 128 * 4
    rows = min(rows, max(8, _VMEM_WORKING_SET_CAP // per_row_vmem))
    return _round_rows(rows, batch)


# --------------------------------------------------------------------------
# Wrapper: TripletMarginCosineLoss.forward
# --------------------------------------------------------------------------
def triplet_margin_cosine_loss(anchor, positive, negative, *, margin=1.0,
                               reduction="mean", block_rows=None,
                               tile_bytes_per_input=_DEFAULT_TILE_BYTES_PER_INPUT):
    B, D = anchor.shape
    itemsize = jnp.dtype(anchor.dtype).itemsize
    if block_rows is None:
        tb = _auto_block_rows(B, D, itemsize, int(tile_bytes_per_input))
    else:
        tb = _round_rows(int(block_rows), B)   # correctness/testing knob only

    grid = (pl.cdiv(B, tb),)

    # Explicit scoped-VMEM limit: actual usage + headroom, clamped to stay
    # under v7x's 64 MiB physical VMEM (also covers v5e's 16 MiB default).
    in_bufs = 3 * 2 * tb * D * itemsize
    out_bufs = 2 * tb * 128 * 4
    vmem_limit = int(min(60 << 20,
                         max(16 << 20, in_bufs + out_bufs + _VMEM_HEADROOM)))

    per_row = pl.pallas_call(
        functools.partial(_triplet_rows_kernel, margin=float(margin)),
        out_shape=jax.ShapeDtypeStruct((B, 1), jnp.float32),
        grid=grid,
        in_specs=[
            pl.BlockSpec((tb, D), lambda i: (i, 0)),   # anchor
            pl.BlockSpec((tb, D), lambda i: (i, 0)),   # positive
            pl.BlockSpec((tb, D), lambda i: (i, 0)),   # negative
        ],
        out_specs=pl.BlockSpec((tb, 1), lambda i: (i, 0)),
        compiler_params=pltpu.CompilerParams(
            dimension_semantics=("parallel",),         # 2-TC sharding on v7x
            vmem_limit_bytes=vmem_limit),
    )(anchor, positive, negative)

    if reduction == "none":
        return per_row[:, 0]
    if reduction == "mean":
        return jnp.mean(per_row)     # tiny XLA reduce; no second pallas_call
    return jnp.sum(per_row)          # 'sum'


# --------------------------------------------------------------------------
# Pure-JAX reference (faithful to the PyTorch module, incl. torch's
# clamp-the-product-of-norms eps handling).
# --------------------------------------------------------------------------
def _reference(anchor, positive, negative, margin=1.0, reduction="mean"):
    anchor = anchor.astype(jnp.float32)
    positive = positive.astype(jnp.float32)
    negative = negative.astype(jnp.float32)

    def cos(x, y):
        w12 = jnp.sum(x * y, axis=1)
        w1 = jnp.sum(x * x, axis=1)
        w2 = jnp.sum(y * y, axis=1)
        return w12 / jnp.sqrt(jnp.maximum(w1 * w2, COS_EPS * COS_EPS))

    pos_dist = 1.0 - cos(anchor, positive)
    neg_dist = 1.0 - cos(anchor, negative)
    loss = jnp.maximum(pos_dist - neg_dist + margin, 0.0)
    if reduction == "mean":
        return jnp.mean(loss)
    if reduction == "sum":
        return jnp.sum(loss)
    return loss


if __name__ == "__main__":
    key = jax.random.PRNGKey(0)
    k1, k2, k3 = jax.random.split(key, 3)
    B, D = 64, 128  # small embedding batch, lane-dense feature dim
    anchor = jax.random.normal(k1, (B, D), dtype=jnp.float32)
    positive = jax.random.normal(k2, (B, D), dtype=jnp.float32)
    negative = jax.random.normal(k3, (B, D), dtype=jnp.float32)

    # Production path: auto-sized tiles (single full block at this tiny size).
    loss = jax.block_until_ready(
        triplet_margin_cosine_loss(anchor, positive, negative,
                                   margin=1.0, reduction="mean"))
    ref = _reference(anchor, positive, negative, 1.0, "mean")
    assert jnp.allclose(loss, ref, atol=1e-5, rtol=1e-5), (loss, ref)

    # 'sum' and 'none' reductions.
    loss_sum = jax.block_until_ready(
        triplet_margin_cosine_loss(anchor, positive, negative,
                                   margin=1.0, reduction="sum"))
    ref_sum = _reference(anchor, positive, negative, 1.0, "sum")
    assert jnp.allclose(loss_sum, ref_sum, atol=1e-4, rtol=1e-5), (loss_sum, ref_sum)

    loss_none = jax.block_until_ready(
        triplet_margin_cosine_loss(anchor, positive, negative,
                                   margin=1.0, reduction="none"))
    ref_none = _reference(anchor, positive, negative, 1.0, "none")
    assert jnp.allclose(loss_none, ref_none, atol=1e-5, rtol=1e-5)

    # Tiled path with a non-dividing batch to exercise the partial last block
    # (correctness check only — production stays on the auto-sized tiles).
    B2 = 200
    a2 = jax.random.normal(k1, (B2, D), dtype=jnp.float32)
    p2 = jax.random.normal(k2, (B2, D), dtype=jnp.float32)
    n2 = jax.random.normal(k3, (B2, D), dtype=jnp.float32)
    loss2 = jax.block_until_ready(
        triplet_margin_cosine_loss(a2, p2, n2, margin=1.0, reduction="mean",
                                   block_rows=128))
    ref2 = _reference(a2, p2, n2, 1.0, "mean")
    assert jnp.allclose(loss2, ref2, atol=1e-5, rtol=1e-5), (loss2, ref2)

    # bf16 inputs: streamed in native dtype (half the HBM traffic), f32 math.
    ab = anchor.astype(jnp.bfloat16)
    pb = positive.astype(jnp.bfloat16)
    nb = negative.astype(jnp.bfloat16)
    loss_bf = jax.block_until_ready(
        triplet_margin_cosine_loss(ab, pb, nb, margin=1.0, reduction="mean"))
    ref_bf = _reference(ab, pb, nb, 1.0, "mean")
    assert jnp.allclose(loss_bf, ref_bf, atol=1e-5, rtol=1e-5), (loss_bf, ref_bf)

    print("KERNEL_OK")
</pallas_src>

<mosaic_0001>
module attributes {stable_mosaic.version = 11 : i64} {
  func.func @_triplet_rows_kernel(%arg0: i32, %arg1: memref<64x128xf32, #tpu.memory_space<vmem>>, %arg2: memref<64x128xf32, #tpu.memory_space<vmem>>, %arg3: memref<64x128xf32, #tpu.memory_space<vmem>>, %arg4: memref<64x1xf32, #tpu.memory_space<vmem>>) attributes {dimension_semantics = [#tpu.dimension_semantics<parallel>], iteration_bounds = array<i64: 1>, scalar_prefetch = 0 : i64, scratch_operands = 0 : i64, tpu.core_type = #tpu.core_type<tc>, window_params = [{transform_indices = @transform_0, window_bounds = array<i64: 64, 128>}, {transform_indices = @transform_1, window_bounds = array<i64: 64, 128>}, {transform_indices = @transform_2, window_bounds = array<i64: 64, 128>}, {transform_indices = @transform_3, window_bounds = array<i64: 64, 1>}]} {
    %c0 = arith.constant 0 : index
    %c0_0 = arith.constant 0 : index
    %0 = vector.load %arg1[%c0, %c0_0] : memref<64x128xf32, #tpu.memory_space<vmem>>, vector<64x128xf32>
    %c0_1 = arith.constant 0 : index
    %c0_2 = arith.constant 0 : index
    %1 = vector.load %arg2[%c0_1, %c0_2] : memref<64x128xf32, #tpu.memory_space<vmem>>, vector<64x128xf32>
    %c0_3 = arith.constant 0 : index
    %c0_4 = arith.constant 0 : index
    %2 = vector.load %arg3[%c0_3, %c0_4] : memref<64x128xf32, #tpu.memory_space<vmem>>, vector<64x128xf32>
    %3 = arith.mulf %0, %1 : vector<64x128xf32>
    %cst = arith.constant dense<0.000000e+00> : vector<64xf32>
    %4 = vector.multi_reduction <add>, %3, %cst [1] : vector<64x128xf32> to vector<64xf32>
    %5 = vector.shape_cast %4 : vector<64xf32> to vector<64x1xf32>
    %6 = arith.mulf %0, %2 : vector<64x128xf32>
    %cst_5 = arith.constant dense<0.000000e+00> : vector<64xf32>
    %7 = vector.multi_reduction <add>, %6, %cst_5 [1] : vector<64x128xf32> to vector<64xf32>
    %8 = vector.shape_cast %7 : vector<64xf32> to vector<64x1xf32>
    %9 = arith.mulf %0, %0 : vector<64x128xf32>
    %cst_6 = arith.constant dense<0.000000e+00> : vector<64xf32>
    %10 = vector.multi_reduction <add>, %9, %cst_6 [1] : vector<64x128xf32> to vector<64xf32>
    %11 = vector.shape_cast %10 : vector<64xf32> to vector<64x1xf32>
    %12 = arith.mulf %1, %1 : vector<64x128xf32>
    %cst_7 = arith.constant dense<0.000000e+00> : vector<64xf32>
    %13 = vector.multi_reduction <add>, %12, %cst_7 [1] : vector<64x128xf32> to vector<64xf32>
    %14 = vector.shape_cast %13 : vector<64xf32> to vector<64x1xf32>
    %15 = arith.mulf %2, %2 : vector<64x128xf32>
    %cst_8 = arith.constant dense<0.000000e+00> : vector<64xf32>
    %16 = vector.multi_reduction <add>, %15, %cst_8 [1] : vector<64x128xf32> to vector<64xf32>
    %17 = vector.shape_cast %16 : vector<64xf32> to vector<64x1xf32>
    %18 = arith.mulf %11, %14 : vector<64x1xf32>
    %cst_9 = arith.constant 1.000000e-16 : f32
    %19 = vector.broadcast %cst_9 : f32 to vector<64x1xf32>
    %20 = arith.maximumf %18, %19 : vector<64x1xf32>
    %21 = math.rsqrt %20 : vector<64x1xf32>
    %22 = arith.mulf %5, %21 : vector<64x1xf32>
    %23 = arith.mulf %11, %17 : vector<64x1xf32>
    %cst_10 = arith.constant 1.000000e-16 : f32
    %24 = vector.broadcast %cst_10 : f32 to vector<64x1xf32>
    %25 = arith.maximumf %23, %24 : vector<64x1xf32>
    %26 = math.rsqrt %25 : vector<64x1xf32>
    %27 = arith.mulf %8, %26 : vector<64x1xf32>
    %28 = arith.subf %27, %22 : vector<64x1xf32>
    %cst_11 = arith.constant 1.000000e+00 : f32
    %29 = vector.broadcast %cst_11 : f32 to vector<64x1xf32>
    %30 = arith.addf %28, %29 : vector<64x1xf32>
    %cst_12 = arith.constant 0.000000e+00 : f32
    %31 = vector.broadcast %cst_12 : f32 to vector<64x1xf32>
    %32 = arith.maximumf %30, %31 : vector<64x1xf32>
    %c0_13 = arith.constant 0 : index
    %c0_14 = arith.constant 0 : index
    %33 = vector.load %arg4[%c0_13, %c0_14] : memref<64x1xf32, #tpu.memory_space<vmem>>, vector<64x1xf32>
    tpu.vector_store %arg4[%c0_13, %c0_14], %32 {strides = array<i32>} : memref<64x1xf32, #tpu.memory_space<vmem>>, vector<64x1xf32>,
    return
  }
  func.func @transform_0(%arg0: i32) -> (i32, i32) {
    %c0_i32 = arith.constant 0 : i32
    %c0_i32_0 = arith.constant 0 : i32
    return %arg0, %c0_i32 : i32, i32
  }
  func.func @transform_1(%arg0: i32) -> (i32, i32) {
    %c0_i32 = arith.constant 0 : i32
    %c0_i32_0 = arith.constant 0 : i32
    return %arg0, %c0_i32 : i32, i32
  }
  func.func @transform_2(%arg0: i32) -> (i32, i32) {
    %c0_i32 = arith.constant 0 : i32
    %c0_i32_0 = arith.constant 0 : i32
    return %arg0, %c0_i32 : i32, i32
  }
  func.func @transform_3(%arg0: i32) -> (i32, i32) {
    %c0_i32 = arith.constant 0 : i32
    %c0_i32_0 = arith.constant 0 : i32
    return %arg0, %c0_i32 : i32, i32
  }
}

</mosaic_0001>

<bundles_post_ra>
// kernel: tpu_custom_call.1
= control target key start
LH: loop header
LB: loop body
LE: loop exit
PB: predicated region body
PF: predicated region fallthrough
CT: control target
= control target key end

     0   :  { %8 = vsyncpa [#allocation3], 0  ;;  %s566_s0 = inlined_call_operand.hbm [shape: f32[64,128], index: 0, kind: input, shape index: {}]   ;;  %s567_s1 = inlined_call_operand.hbm [shape: f32[64,128], index: 1, kind: input, shape index: {}]   ;;  %s568_s2 = inlined_call_operand.hbm [shape: f32[64,128], index: 2, kind: input, shape index: {}]   ;;  %s569_s3 = inlined_call_operand.vmem [shape: f32[64,1], index: 3, kind: output, shape index: {}]  }
   0x1   :  { %9 = vsyncpa [#allocation5], 0  ;;  %s409_s12 = smov [#allocation4]   ;;  %s410_s14 = smov [#allocation2]  }
   0x2   :  { %s27_s13 = sshll.u32 %s409_s12, 4  ;;  %s15_s15 = sshll.u32 %s410_s14, 4  ;;  %s28_s13 = int_to_ptr.vmem [resolvable:$true] %s27_s13  ;;  %s434_s15 = int_to_ptr.vmem [resolvable:$true] %s15_s15 }
   0x3   :  { %s339_s18 = scalar_lea.hbm %s567_s1, 1024 }
   0x4   :  { %p340_p0 = scmp.ne.s32.totalorder %s567_s1, %s339_s18  ;;  %p343_p1 = scmp.lt.u32.totalorder %s339_s18, %s567_s1 }
   0x6   :  { %p345_p2 = pnand %p343_p1, %p340_p0 }
   0x8   :  { %348 = shalt.err (!%p345_p2)
}
   0x9   :  { %s349_s23 = scalar_lea.vmem %s28_s13, 1024  ;;  %p354_p4 = scmp.lt.s32.totalorder %s28_s13, %s28_s13 }
   0xa   :  { %p350_p3 = scmp.ne.s32.totalorder %s28_s13, %s349_s23  ;;  %p355_p5 = scmp.lt.s32.totalorder %s349_s23, %s349_s23 }
   0xc   :  { %p356_p6 = por %p355_p5, %p354_p4 }
   0xe   :  { %p357_p7 = pnand %p356_p6, %p350_p3 }
  0x10   :  { %360 = shalt.err (!%p357_p7)
}
  0x11   :  { %s411_s24 = smov 128   ;;  %s412_s25 = smov 8  }
  0x12   :  { %33 = dma.hbm_to_vmem [thread:$0]  %s567_s1, 1024, %s28_s13, [#allocation5], %s411_s24, %s411_s24, %s412_s25  }
  0x13   :  { %s361_s30 = scalar_lea.hbm %s566_s0, 1024 }
  0x14   :  { %p362_p8 = scmp.ne.s32.totalorder %s566_s0, %s361_s30  ;;  %p365_p9 = scmp.lt.u32.totalorder %s361_s30, %s566_s0 }
  0x16   :  { %p367_p10 = pnand %p365_p9, %p362_p8 }
  0x18   :  { %370 = shalt.err (!%p367_p10)
}
  0x19   :  { %s371_s8 = scalar_lea.vmem %s434_s15, 1024  ;;  %p376_p12 = scmp.lt.s32.totalorder %s434_s15, %s434_s15 }
  0x1a   :  { %p372_p11 = scmp.ne.s32.totalorder %s434_s15, %s371_s8  ;;  %p377_p13 = scmp.lt.s32.totalorder %s371_s8, %s371_s8 }
  0x1c   :  { %p378_p0 = por %p377_p13, %p376_p12 }
  0x1e   :  { %p379_p1 = pnand %p378_p0, %p372_p11 }
  0x20   :  { %382 = shalt.err (!%p379_p1)
}
  0x21   :  { %21 = dma.hbm_to_vmem [thread:$0]  %s566_s0, 1024, %s434_s15, [#allocation3], %s411_s24, %s411_s24, %s412_s25  }
  0x22   :  { %s413_s10 = smov [#allocation6]   ;;  %s383_s14 = scalar_lea.hbm %s568_s2, 1024 }
  0x23   :  { %s39_s11 = sshll.u32 %s413_s10, 4  ;;  %p384_p2 = scmp.ne.s32.totalorder %s568_s2, %s383_s14  ;;  %s40_s11 = int_to_ptr.vmem [resolvable:$true] %s39_s11 }
  0x24   :  { %p387_p3 = scmp.lt.u32.totalorder %s383_s14, %s568_s2 }
  0x26   :  { %p389_p4 = pnand %p387_p3, %p384_p2 }
  0x28   :  { %392 = shalt.err (!%p389_p4)
}
  0x29   :  { %s393_s20 = scalar_lea.vmem %s40_s11, 1024  ;;  %p398_p6 = scmp.lt.s32.totalorder %s40_s11, %s40_s11 }
  0x2a   :  { %p394_p5 = scmp.ne.s32.totalorder %s40_s11, %s393_s20  ;;  %p399_p7 = scmp.lt.s32.totalorder %s393_s20, %s393_s20 }
  0x2c   :  { %p400_p8 = por %p399_p7, %p398_p6 }
  0x2e   :  { %p401_p9 = pnand %p400_p8, %p394_p5 }
  0x30   :  { %404 = shalt.err (!%p401_p9)
}
  0x31   :  { %45 = dma.hbm_to_vmem [thread:$0]  %s568_s2, 1024, %s40_s11, [#allocation5], %s411_s24, %s411_s24, %s412_s25  }
  0x32   :  { %405 = dma.done.wait [#allocation3], 1024  }
  0x33   :  { %406 = vsyncadd [#allocation3], 4294966272 }
  0x34   :  { %407 = dma.done.wait [#allocation5], 2048  }
  0x35   :  { %408 = vsyncadd [#allocation5], 4294965248  ;;  %v486_v0 = vld [vmem:[#allocation2 + $0x10] sm:$0xff]  ;;  %v488_v1 = vld [vmem:[#allocation2] sm:$0xff]  ;;  %vm287_vm0 = vcmask 7168  }
  0x36   :  { %v490_v2 = vld [vmem:[#allocation2 + $0x18] sm:$0xff]  ;;  %v129_v3 = vmul.f32 %v486_v0, %v486_v0  ;;  %v127_v4 = vmul.f32 %v488_v1, %v488_v1  ;;  %v496_v5 = vld [vmem:[#allocation2 + $0x8] sm:$0xff]  ;;  %v504_v9 = vld [vmem:[#allocation2 + $0x20] sm:$0xff] }
  0x37   :  { %v130_v6 = vmul.f32 %v490_v2, %v490_v2  ;;  %v128_v7 = vmul.f32 %v496_v5, %v496_v5  ;;  %v502_v8 = vld [vmem:[#allocation2 + $0x28] sm:$0xff]  ;;  %v131_v11 = vmul.f32 %v504_v9, %v504_v9  ;;  %v510_v12 = vld [vmem:[#allocation2 + $0x38] sm:$0xff]  ;;  %v512_v13 = vld [vmem:[#allocation2 + $0x30] sm:$0xff] }
  0x38   :  { %139 = vadd.xlane.f32.xlu1 %v129_v3  ;;  %135 = vadd.xlane.f32.xlu0 %v127_v4  ;;  %v132_v10 = vmul.f32 %v502_v8, %v502_v8  ;;  %v134_v14 = vmul.f32 %v510_v12, %v510_v12  ;;  %v133_v15 = vmul.f32 %v512_v13, %v512_v13  ;;  %v64_v16 = vld [vmem:[#allocation4 + $0x8] sm:$0xff]  ;;  %v63_v17 = vld [vmem:[#allocation4] sm:$0xff]  ;;  %v66_v20 = vld [vmem:[#allocation4 + $0x18] sm:$0xff] }
  0x39   :  { %v152_v18 = vmul.f32 %v64_v16, %v64_v16  ;;  %v151_v19 = vmul.f32 %v63_v17, %v63_v17  ;;  %v65_v21 = vld [vmem:[#allocation4 + $0x10] sm:$0xff]  ;;  %v154_v22 = vmul.f32 %v66_v20, %v66_v20  ;;  %v68_v24 = vld [vmem:[#allocation4 + $0x28] sm:$0xff]  ;;  %v67_v25 = vld [vmem:[#allocation4 + $0x20] sm:$0xff]  ;;  %v80_v48 = vmul.f32 %v64_v16, %v496_v5 }
  0x3a   :  { %v153_v23 = vmul.f32 %v65_v21, %v65_v21  ;;  %v156_v26 = vmul.f32 %v68_v24, %v68_v24  ;;  %v155_v27 = vmul.f32 %v67_v25, %v67_v25  ;;  %v70_v28 = vld [vmem:[#allocation4 + $0x38] sm:$0xff]  ;;  %v69_v29 = vld [vmem:[#allocation4 + $0x30] sm:$0xff]  ;;  %v72_v32 = vld [vmem:[#allocation6 + $0x8] sm:$0xff]  ;;  %v79_v49 = vmul.f32 %v63_v17, %v488_v1 }
  0x3b   :  { %v158_v30 = vmul.f32 %v70_v28, %v70_v28  ;;  %v157_v31 = vmul.f32 %v69_v29, %v69_v29  ;;  %v71_v33 = vld [vmem:[#allocation6] sm:$0xff]  ;;  %v176_v34 = vmul.f32 %v72_v32, %v72_v32  ;;  %v74_v36 = vld [vmem:[#allocation6 + $0x18] sm:$0xff]  ;;  %v73_v37 = vld [vmem:[#allocation6 + $0x10] sm:$0xff]  ;;  %v82_v50 = vmul.f32 %v66_v20, %v490_v2 }
  0x3c   :  { %141 = vadd.xlane.f32.xlu1 %v130_v6  ;;  %137 = vadd.xlane.f32.xlu0 %v128_v7  ;;  %v175_v35 = vmul.f32 %v71_v33, %v71_v33  ;;  %v178_v38 = vmul.f32 %v74_v36, %v74_v36  ;;  %v177_v39 = vmul.f32 %v73_v37, %v73_v37  ;;  %v76_v40 = vld [vmem:[#allocation6 + $0x28] sm:$0xff]  ;;  %v75_v41 = vld [vmem:[#allocation6 + $0x20] sm:$0xff]  ;;  %v78_v44 = vld [vmem:[#allocation6 + $0x38] sm:$0xff] }
  0x3d   :  { %v180_v42 = vmul.f32 %v76_v40, %v76_v40  ;;  %v179_v43 = vmul.f32 %v75_v41, %v75_v41  ;;  %v77_v45 = vld [vmem:[#allocation6 + $0x30] sm:$0xff]  ;;  %v182_v46 = vmul.f32 %v78_v44, %v78_v44  ;;  %v81_v51 = vmul.f32 %v65_v21, %v486_v0 }
  0x3e   :  { %v181_v47 = vmul.f32 %v77_v45, %v77_v45  ;;  %v84_v52 = vmul.f32 %v68_v24, %v502_v8  ;;  %v83_v53 = vmul.f32 %v67_v25, %v504_v9  ;;  %v86_v54 = vmul.f32 %v70_v28, %v510_v12 }
  0x3f   :  { %v85_v55 = vmul.f32 %v69_v29, %v512_v13  ;;  %v104_v56 = vmul.f32 %v72_v32, %v496_v5  ;;  %v103_v57 = vmul.f32 %v71_v33, %v488_v1  ;;  %v106_v58 = vmul.f32 %v74_v36, %v490_v2 }
  0x40   :  { %145 = vadd.xlane.f32.xlu1 %v132_v10  ;;  %143 = vadd.xlane.f32.xlu0 %v131_v11  ;;  %v105_v59 = vmul.f32 %v73_v37, %v486_v0  ;;  %v108_v60 = vmul.f32 %v76_v40, %v502_v8  ;;  %v107_v61 = vmul.f32 %v75_v41, %v504_v9 }
  0x41   :  { %v110_v62 = vmul.f32 %v78_v44, %v510_v12  ;;  %v109_v63 = vmul.f32 %v77_v45, %v512_v13 }
  0x44   :  { %149 = vadd.xlane.f32.xlu1 %v134_v14  ;;  %147 = vadd.xlane.f32.xlu0 %v133_v15 }
  0x48   :  { %161 = vadd.xlane.f32.xlu1 %v152_v18  ;;  %159 = vadd.xlane.f32.xlu0 %v151_v19 }
  0x4c   :  { %165 = vadd.xlane.f32.xlu1 %v154_v22  ;;  %163 = vadd.xlane.f32.xlu0 %v153_v23 }
  0x50   :  { %169 = vadd.xlane.f32.xlu1 %v156_v26  ;;  %167 = vadd.xlane.f32.xlu0 %v155_v27 }
  0x54   :  { %173 = vadd.xlane.f32.xlu1 %v158_v30  ;;  %171 = vadd.xlane.f32.xlu0 %v157_v31 }
  0x58   :  { %185 = vadd.xlane.f32.xlu1 %v176_v34  ;;  %183 = vadd.xlane.f32.xlu0 %v175_v35 }
  0x5c   :  { %189 = vadd.xlane.f32.xlu1 %v178_v38  ;;  %187 = vadd.xlane.f32.xlu0 %v177_v39 }
  0x60   :  { %193 = vadd.xlane.f32.xlu1 %v180_v42  ;;  %191 = vadd.xlane.f32.xlu0 %v179_v43 }
  0x64   :  { %197 = vadd.xlane.f32.xlu1 %v182_v46  ;;  %195 = vadd.xlane.f32.xlu0 %v181_v47 }
  0x68   :  { %89 = vadd.xlane.f32.xlu1 %v80_v48  ;;  %87 = vadd.xlane.f32.xlu0 %v79_v49 }
  0x6c   :  { %93 = vadd.xlane.f32.xlu1 %v82_v50  ;;  %91 = vadd.xlane.f32.xlu0 %v81_v51 }
  0x70   :  { %97 = vadd.xlane.f32.xlu1 %v84_v52  ;;  %95 = vadd.xlane.f32.xlu0 %v83_v53 }
  0x74   :  { %101 = vadd.xlane.f32.xlu1 %v86_v54  ;;  %99 = vadd.xlane.f32.xlu0 %v85_v55 }
  0x78   :  { %113 = vadd.xlane.f32.xlu1 %v104_v56  ;;  %111 = vadd.xlane.f32.xlu0 %v103_v57 }
  0x7c   :  { %117 = vadd.xlane.f32.xlu1 %v106_v58  ;;  %115 = vadd.xlane.f32.xlu0 %v105_v59 }
  0x80   :  { %121 = vadd.xlane.f32.xlu1 %v108_v60  ;;  %119 = vadd.xlane.f32.xlu0 %v107_v61 }
  0x84   :  { %125 = vadd.xlane.f32.xlu1 %v110_v62  ;;  %123 = vadd.xlane.f32.xlu0 %v109_v63 }
  0xc5   :  { %v140_v1 = vpop.xlane.xlu1 %139  ;;  %v136_v3 = vpop.xlane.xlu0 %135 }
  0xc9   :  { %v142_v4 = vpop.xlane.xlu1 %141  ;;  %v138_v2 = vpop.xlane.xlu0 %137 }
  0xcd   :  { %v146_v5 = vpop.xlane.xlu1 %145  ;;  %v144_v0 = vpop.xlane.xlu0 %143 }
  0xd1   :  { %v150_v6 = vpop.xlane.xlu1 %149  ;;  %v148_v7 = vpop.xlane.xlu0 %147 }
  0xd5   :  { %v162_v10 = vpop.xlane.xlu1 %161  ;;  %v160_v8 = vpop.xlane.xlu0 %159 }
  0xd6   :  { %v200_v22 = vmul.f32 %v162_v10, %v138_v2  ;;  %v199_v23 = vmul.f32 %v160_v8, %v136_v3 }
  0xd8   :  { %v208_v28 = vmax.f32 %v200_v22, 1e-16  ;;  %v207_v30 = vmax.f32 %v199_v23, 1e-16 }
  0xd9   :  { %v166_v11 = vpop.xlane.xlu1 %165  ;;  %v164_v9 = vpop.xlane.xlu0 %163 }
  0xda   :  { %v202_v24 = vmul.f32 %v166_v11, %v142_v4  ;;  %v201_v31 = vmul.f32 %v164_v9, %v140_v1  ;;  %307 = vrsqrt.f32 %v208_v28 }
  0xdb   :  { %309 = vrsqrt.f32 %v207_v30 }
  0xdc   :  { %v210_v32 = vmax.f32 %v202_v24, 1e-16  ;;  %v209_v40 = vmax.f32 %v201_v31, 1e-16 }
  0xdd   :  { %v170_v14 = vpop.xlane.xlu1 %169  ;;  %v168_v15 = vpop.xlane.xlu0 %167 }
  0xde   :  { %v204_v33 = vmul.f32 %v170_v14, %v146_v5  ;;  %v203_v41 = vmul.f32 %v168_v15, %v144_v0  ;;  %311 = vrsqrt.f32 %v210_v32 }
  0xe0   :  { %v212_v42 = vmax.f32 %v204_v33, 1e-16  ;;  %v211_v50 = vmax.f32 %v203_v41, 1e-16 }
  0xe1   :  { %v174_v16 = vpop.xlane.xlu1 %173  ;;  %v172_v12 = vpop.xlane.xlu0 %171 }
  0xe2   :  { %v206_v43 = vmul.f32 %v174_v16, %v150_v6  ;;  %v205_v51 = vmul.f32 %v172_v12, %v148_v7 }
  0xe4   :  { %v214_v52 = vmax.f32 %v206_v43, 1e-16  ;;  %v213_v59 = vmax.f32 %v205_v51, 1e-16  ;;  %v308_v60 = vpop.eup %307 }
  0xe5   :  { %v186_v17 = vpop.xlane.xlu1 %185  ;;  %v184_v13 = vpop.xlane.xlu0 %183 }
  0xe6   :  { %v232_v27 = vmul.f32 %v186_v17, %v138_v2  ;;  %v231_v29 = vmul.f32 %v184_v13, %v136_v3 }
  0xe8   :  { %v240_v36 = vmax.f32 %v232_v27, 1e-16  ;;  %v239_v38 = vmax.f32 %v231_v29, 1e-16 }
  0xe9   :  { %v190_v18 = vpop.xlane.xlu1 %189  ;;  %v188_v19 = vpop.xlane.xlu0 %187 }
  0xea   :  { %v234_v37 = vmul.f32 %v190_v18, %v142_v4  ;;  %v233_v39 = vmul.f32 %v188_v19, %v140_v1  ;;  %313 = vrsqrt.f32 %v240_v36  ;;  %v310_v1 = vpop.eup %309 }
  0xeb   :  { %315 = vrsqrt.f32 %v239_v38  ;;  %v312_v3 = vpop.eup %311 }
  0xec   :  { %v242_v46 = vmax.f32 %v234_v37, 1e-16  ;;  %v241_v48 = vmax.f32 %v233_v39, 1e-16  ;;  %317 = vrsqrt.f32 %v209_v40 }
  0xed   :  { %v194_v20 = vpop.xlane.xlu1 %193  ;;  %v192_v21 = vpop.xlane.xlu0 %191  ;;  %319 = vrsqrt.f32 %v212_v42 }
  0xee   :  { %v236_v47 = vmul.f32 %v194_v20, %v146_v5  ;;  %v235_v49 = vmul.f32 %v192_v21, %v144_v0  ;;  %321 = vrsqrt.f32 %v242_v46 }
  0xef   :  { %323 = vrsqrt.f32 %v241_v48 }
  0xf0   :  { %v244_v56 = vmax.f32 %v236_v47, 1e-16  ;;  %v243_v57 = vmax.f32 %v235_v49, 1e-16  ;;  %325 = vrsqrt.f32 %v211_v50 }
  0xf1   :  { %v198_v25 = vpop.xlane.xlu1 %197  ;;  %v196_v26 = vpop.xlane.xlu0 %195  ;;  %327 = vrsqrt.f32 %v214_v52 }
  0xf2   :  { %v238_v53 = vmul.f32 %v198_v25, %v150_v6  ;;  %v237_v58 = vmul.f32 %v196_v26, %v148_v7  ;;  %329 = vrsqrt.f32 %v244_v56 }
  0xf3   :  { %331 = vrsqrt.f32 %v243_v57 }
  0xf4   :  { %v246_v61 = vmax.f32 %v238_v53, 1e-16  ;;  %v245_v4 = vmax.f32 %v237_v58, 1e-16  ;;  %v314_v2 = vpop.eup %313  ;;  %333 = vrsqrt.f32 %v213_v59 }
  0xf5   :  { %v90_v34 = vpop.xlane.xlu1 %89  ;;  %v88_v35 = vpop.xlane.xlu0 %87 }
  0xf6   :  { %v316_v5 = vpop.eup %315  ;;  %335 = vrsqrt.f32 %v246_v61  ;;  %v224_v7 = vmul.f32 %v308_v60, %v90_v34  ;;  %v223_v8 = vmul.f32 %v310_v1, %v88_v35 }
  0xf7   :  { %v318_v10 = vpop.eup %317  ;;  %337 = vrsqrt.f32 %v245_v4 }
  0xf8   :  { %v320_v14 = vpop.eup %319 }
  0xf9   :  { %v94_v44 = vpop.xlane.xlu1 %93  ;;  %v92_v45 = vpop.xlane.xlu0 %91 }
  0xfa   :  { %v322_v15 = vpop.eup %321  ;;  %v226_v13 = vmul.f32 %v312_v3, %v94_v44  ;;  %v225_v18 = vmul.f32 %v318_v10, %v92_v45 }
  0xfb   :  { %v324_v17 = vpop.eup %323 }
  0xfc   :  { %v326_v21 = vpop.eup %325 }
  0xfd   :  { %v98_v54 = vpop.xlane.xlu1 %97  ;;  %v96_v55 = vpop.xlane.xlu0 %95 }
  0xfe   :  { %v328_v26 = vpop.eup %327  ;;  %v228_v33 = vmul.f32 %v320_v14, %v98_v54  ;;  %v227_v34 = vmul.f32 %v326_v21, %v96_v55 }
  0xff   :  { %v330_v27 = vpop.eup %329 }
 0x100   :  { %v332_v32 = vpop.eup %331 }
 0x101   :  { %v102_v62 = vpop.xlane.xlu1 %101  ;;  %v100_v63 = vpop.xlane.xlu0 %99 }
 0x102   :  { %v334_v37 = vpop.eup %333  ;;  %v230_v48 = vmul.f32 %v328_v26, %v102_v62 }
 0x103   :  { %v336_v42 = vpop.eup %335  ;;  %v229_v49 = vmul.f32 %v334_v37, %v100_v63 }
 0x104   :  { %v338_v47 = vpop.eup %337 }
 0x105   :  { %v114_v0 = vpop.xlane.xlu1 %113  ;;  %v112_v6 = vpop.xlane.xlu0 %111 }
 0x106   :  { %v256_v11 = vmul.f32 %v314_v2, %v114_v0  ;;  %v255_v9 = vmul.f32 %v316_v5, %v112_v6 }
 0x108   :  { %v264_v16 = vsub.f32 %v256_v11, %v224_v7  ;;  %v263_v12 = vsub.f32 %v255_v9, %v223_v8 }
 0x109   :  { %v118_v19 = vpop.xlane.xlu1 %117  ;;  %v116_v20 = vpop.xlane.xlu0 %115 }
 0x10a   :  { %v272_v22 = vadd.f32 1.0, %v264_v16  ;;  %v271_v23 = vadd.f32 1.0, %v263_v12  ;;  %v258_v24 = vmul.f32 %v322_v15, %v118_v19  ;;  %v257_v25 = vmul.f32 %v324_v17, %v116_v20 }
 0x10c   :  { %v280_v28 = vmax.f32 %v272_v22, 0.0  ;;  %v279_v29 = vmax.f32 %v271_v23, 0.0  ;;  %v266_v30 = vsub.f32 %v258_v24, %v226_v13  ;;  %v265_v31 = vsub.f32 %v257_v25, %v225_v18 }
 0x10d   :  { %v122_v35 = vpop.xlane.xlu1 %121  ;;  %v120_v36 = vpop.xlane.xlu0 %119 }
 0x10e   :  { %289 = vst.msk [vmem:[%s569_s3 + $0x8] sm:$0xff] %vm287_vm0, %v280_v28  ;;  %288 = vst.msk [vmem:[%s569_s3] sm:$0xff] %vm287_vm0, %v279_v29  ;;  %v274_v38 = vadd.f32 1.0, %v266_v30  ;;  %v273_v39 = vadd.f32 1.0, %v265_v31  ;;  %v260_v40 = vmul.f32 %v330_v27, %v122_v35  ;;  %v259_v41 = vmul.f32 %v332_v32, %v120_v36 }
 0x110   :  { %v282_v43 = vmax.f32 %v274_v38, 0.0  ;;  %v281_v44 = vmax.f32 %v273_v39, 0.0  ;;  %v268_v45 = vsub.f32 %v260_v40, %v228_v33  ;;  %v267_v46 = vsub.f32 %v259_v41, %v227_v34 }
 0x111   :  { %v126_v50 = vpop.xlane.xlu1 %125  ;;  %v124_v51 = vpop.xlane.xlu0 %123 }
 0x112   :  { %291 = vst.msk [vmem:[%s569_s3 + $0x18] sm:$0xff] %vm287_vm0, %v282_v43  ;;  %290 = vst.msk [vmem:[%s569_s3 + $0x10] sm:$0xff] %vm287_vm0, %v281_v44  ;;  %v276_v52 = vadd.f32 1.0, %v268_v45  ;;  %v275_v53 = vadd.f32 1.0, %v267_v46  ;;  %v262_v54 = vmul.f32 %v336_v42, %v126_v50  ;;  %v261_v55 = vmul.f32 %v338_v47, %v124_v51 }
 0x114   :  { %v284_v56 = vmax.f32 %v276_v52, 0.0  ;;  %v283_v57 = vmax.f32 %v275_v53, 0.0  ;;  %v270_v58 = vsub.f32 %v262_v54, %v230_v48  ;;  %v269_v59 = vsub.f32 %v261_v55, %v229_v49 }
 0x116   :  { %293 = vst.msk [vmem:[%s569_s3 + $0x28] sm:$0xff] %vm287_vm0, %v284_v56  ;;  %292 = vst.msk [vmem:[%s569_s3 + $0x20] sm:$0xff] %vm287_vm0, %v283_v57  ;;  %v278_v60 = vadd.f32 1.0, %v270_v58  ;;  %v277_v61 = vadd.f32 1.0, %v269_v59 }
 0x118   :  { %v286_v62 = vmax.f32 %v278_v60, 0.0  ;;  %v285_v63 = vmax.f32 %v277_v61, 0.0 }
 0x11a   :  { %295 = vst.msk [vmem:[%s569_s3 + $0x38] sm:$0xff] %vm287_vm0, %v286_v62  ;;  %294 = vst.msk [vmem:[%s569_s3 + $0x30] sm:$0xff] %vm287_vm0, %v285_v63 }
 0x11b   :  { %300 = vsyncpa [#allocation3], 1 }
 0x11c   :  { %301 = vsyncpa [#allocation5], 1 }

</bundles_post_ra>
